<compile_context>
chip_gen: v7x
topology: tpu7x:2x2x1
jax: 0.10.0
libtpu: 0.0.40
codegen_flags: <defaults>
</compile_context>

<pallas_src>
import math
import functools

import jax
import jax.numpy as jnp
from jax.experimental import pallas as pl
from jax.experimental.pallas import tpu as pltpu


# Conservative VMEM budget for the pipelined blocks (fits v7x/v6e/v5e).
_VMEM_BLOCK_BUDGET = 32 * 1024 * 1024
_VMEM_LIMIT_BYTES = 48 * 1024 * 1024


def _posenc_eval_kernel(x_ref, pe_ref, o_ref):
    # x_ref: (tile_b, n) ; pe_ref: (1, n) ; add broadcasts pe over the batch rows.
    o_ref[...] = (x_ref[...] + pe_ref[...]).astype(o_ref.dtype)


def _posenc_train_kernel(x_ref, pe_ref, u_ref, o_ref, *, p_drop):
    # u_ref: uniform [0,1) f32 noise with the same (tile_b, n) block as x.
    y = x_ref[...] + pe_ref[...]
    keep = u_ref[...] >= jnp.float32(p_drop)
    scale = jnp.asarray(1.0 / (1.0 - p_drop), dtype=y.dtype)
    o_ref[...] = jnp.where(keep, y * scale, jnp.zeros_like(y)).astype(o_ref.dtype)


def make_pe(d_model, max_len, dtype=jnp.float32):
    """Sinusoidal table exactly as the torch module's __init__ builds it ([max_len, d_model])."""
    position = jnp.arange(max_len, dtype=jnp.float32)[:, None]            # [max_len, 1]
    div_term = jnp.exp(jnp.arange(0, d_model, 2, dtype=jnp.float32)
                       * (-math.log(10000.0) / d_model))                  # [d_model//2]
    ang = position * div_term                                             # [max_len, d_model//2]
    pe = jnp.zeros((max_len, d_model), dtype=jnp.float32)
    pe = pe.at[:, 0::2].set(jnp.sin(ang))
    pe = pe.at[:, 1::2].set(jnp.cos(ang))
    return pe.astype(dtype)


def _pick_batch_tile(b, n, itemsize, budget):
    """Largest legal batch tile (mult of 8 or == b) fitting the VMEM budget; keep >=2 steps if possible."""
    def fits(tb):
        # in + out + mask double-buffered, pe double-buffered (1 row).
        return (6 * tb + 2) * n * itemsize <= budget

    cands = sorted(set([t for t in range(8, b + 1, 8) if b % t == 0] + [b]))
    fitting = [t for t in cands if fits(t)] or [cands[0]]
    multi = [t for t in fitting if b // t >= 2]       # >=2 parallel blocks for megacore (v7x)
    return max(multi) if multi else max(fitting)


def positional_encoding(x, pe, *, p_drop=0.1, training=False, rng_key=None):
    """x: [batch, seq, d_model]; pe: [max_len, d_model] with max_len >= seq."""
    b, s, d = x.shape
    assert pe.shape[0] >= s and pe.shape[1] == d
    n = s * d

    # Lane-dense 2-D views: one batch element per row of length seq*d_model.
    x2d = x.reshape(b, n)
    pe_flat = pe[:s].astype(x.dtype).reshape(1, n)

    tb = _pick_batch_tile(b, n, jnp.dtype(x.dtype).itemsize, _VMEM_BLOCK_BUDGET)
    grid = (b // tb,)

    cp = pltpu.CompilerParams(
        dimension_semantics=("parallel",),
        vmem_limit_bytes=_VMEM_LIMIT_BYTES,
    )

    row_spec = pl.BlockSpec((tb, n), lambda i: (i, 0))
    pe_spec = pl.BlockSpec((1, n), lambda i: (0, 0))

    if (not training) or p_drop == 0.0:
        out2d = pl.pallas_call(
            _posenc_eval_kernel,
            out_shape=jax.ShapeDtypeStruct((b, n), x.dtype),
            grid_spec=pl.GridSpec(
                grid=grid,
                in_specs=[row_spec, pe_spec],
                out_specs=row_spec,
            ),
            compiler_params=cp,
            input_output_aliases={0: 0},   # in-place add: no second b*s*d HBM alloc
        )(x2d, pe_flat)
    else:
        if rng_key is None:
            rng_key = jax.random.PRNGKey(0)
        # Dropout noise generated host-side of the kernel (portable to interpret mode).
        u = jax.random.uniform(rng_key, (b, n), dtype=jnp.float32)
        kern = functools.partial(_posenc_train_kernel, p_drop=p_drop)
        out2d = pl.pallas_call(
            kern,
            out_shape=jax.ShapeDtypeStruct((b, n), x.dtype),
            grid_spec=pl.GridSpec(
                grid=grid,
                in_specs=[row_spec, pe_spec, row_spec],
                out_specs=row_spec,
            ),
            compiler_params=cp,
            input_output_aliases={0: 0},
        )(x2d, pe_flat, u)

    return out2d.reshape(b, s, d)


if __name__ == "__main__":
    # Small shapes consistent with the module's forward: [batch, seq, d_model].
    batch, seq, d_model, max_len = 16, 32, 32, 64

    key = jax.random.PRNGKey(0)
    kx, kdrop = jax.random.split(key)
    x = jax.random.uniform(kx, (batch, seq, d_model), dtype=jnp.float32)
    pe = make_pe(d_model, max_len)

    # Pure-JAX reference of the torch forward (eval mode).
    ref = x + pe[:seq][None, :, :]

    # ---- Eval path (dropout = identity): exact check. ----
    fwd_eval = jax.jit(functools.partial(positional_encoding, p_drop=0.1, training=False))
    out = jax.block_until_ready(fwd_eval(x, pe))
    assert out.shape == x.shape and out.dtype == x.dtype
    assert jnp.allclose(out, ref, atol=1e-6), "eval mismatch vs reference"

    # ---- Training path (dropout with external uniform mask): structural check. ----
    p = 0.1
    fwd_train = jax.jit(functools.partial(positional_encoding, p_drop=p, training=True))
    out_t = jax.block_until_ready(fwd_train(x, pe, rng_key=kdrop))
    assert out_t.shape == x.shape and out_t.dtype == x.dtype
    kept_ok = jnp.isclose(out_t, ref * (1.0 / (1.0 - p)), atol=1e-5)
    dropped = out_t == 0.0
    assert bool(jnp.all(kept_ok | dropped)), "training outputs are neither kept-scaled nor dropped"
    frac_dropped = float(jnp.mean(dropped.astype(jnp.float32)))
    assert 0.0 < frac_dropped < 0.3, f"dropout fraction looks off: {frac_dropped}"

    print("KERNEL_OK")
</pallas_src>

<mosaic_0001>
module attributes {stable_mosaic.version = 11 : i64} {
  func.func @_posenc_eval_kernel(%arg0: i32, %arg1: memref<8x1024xf32, #tpu.memory_space<vmem>>, %arg2: memref<1x1024xf32, #tpu.memory_space<vmem>>, %arg3: memref<8x1024xf32, #tpu.memory_space<vmem>>) attributes {dimension_semantics = [#tpu.dimension_semantics<parallel>], iteration_bounds = array<i64: 2>, scalar_prefetch = 0 : i64, scratch_operands = 0 : i64, tpu.core_type = #tpu.core_type<tc>, window_params = [{transform_indices = @transform_0, window_bounds = array<i64: 8, 1024>}, {pipeline_mode = #tpu.pipeline_mode<synchronous>, transform_indices = @transform_1, window_bounds = array<i64: 1, 1024>}, {transform_indices = @transform_2, window_bounds = array<i64: 8, 1024>}]} {
    %c0 = arith.constant 0 : index
    %c0_0 = arith.constant 0 : index
    %0 = vector.load %arg1[%c0, %c0_0] : memref<8x1024xf32, #tpu.memory_space<vmem>>, vector<8x1024xf32>
    %c0_1 = arith.constant 0 : index
    %c0_2 = arith.constant 0 : index
    %1 = vector.load %arg2[%c0_1, %c0_2] : memref<1x1024xf32, #tpu.memory_space<vmem>>, vector<1x1024xf32>
    %2 = vector.broadcast %1 : vector<1x1024xf32> to vector<8x1024xf32>
    %3 = arith.addf %0, %2 : vector<8x1024xf32>
    %c0_3 = arith.constant 0 : index
    %c0_4 = arith.constant 0 : index
    %4 = vector.load %arg3[%c0_3, %c0_4] : memref<8x1024xf32, #tpu.memory_space<vmem>>, vector<8x1024xf32>
    tpu.vector_store %arg3[%c0_3, %c0_4], %3 {strides = array<i32>} : memref<8x1024xf32, #tpu.memory_space<vmem>>, vector<8x1024xf32>,
    return
  }
  func.func @transform_0(%arg0: i32) -> (i32, i32) {
    %c0_i32 = arith.constant 0 : i32
    %c0_i32_0 = arith.constant 0 : i32
    return %arg0, %c0_i32 : i32, i32
  }
  func.func @transform_1(%arg0: i32) -> (i32, i32) {
    %c0_i32 = arith.constant 0 : i32
    %c0_i32_0 = arith.constant 0 : i32
    %c0_i32_1 = arith.constant 0 : i32
    return %c0_i32, %c0_i32_0 : i32, i32
  }
  func.func @transform_2(%arg0: i32) -> (i32, i32) {
    %c0_i32 = arith.constant 0 : i32
    %c0_i32_0 = arith.constant 0 : i32
    return %arg0, %c0_i32 : i32, i32
  }
}

</mosaic_0001>

<bundles_post_ra>
// kernel: positional_encoding.1
= control target key start
LH: loop header
LB: loop body
LE: loop exit
PB: predicated region body
PF: predicated region fallthrough
CT: control target
= control target key end

     0   :  { %s309_s9 = smov 0   ;;  %s329_s0 = inlined_call_operand.vmem [shape: f32[16,1024], index: 0, kind: input, shape index: {}, may-alias: {0,2}]   ;;  %s330_s1 = inlined_call_operand.vmem [shape: f32[1,1024], index: 1, kind: input, shape index: {}]   ;;  %s331_s2 = inlined_call_operand.vmem [shape: f32[16,1024], index: 2, kind: output, shape index: {}, may-alias: {0,2}]  }
   0x1 LB: > { %s265_s10 = sadd.s32 4294967295, %s292_s9   ;;  %p269_p0 = scmp.ge.s32.totalorder %s292_s9, 1  ;;  %s292_s9 = sphi %s309_s9, %s12_s9  }
   0x2   : > { %p112_p1 = scmp.lt.s32.totalorder %s292_s9, 3 }
   0x4   : > { %p113_p2 = pnand %p269_p0, %p112_p1 }
   0x5   : > { %p134_p3 = scmp.lt.s32.totalorder (!%p113_p2), %s265_s10, 1  ;;  %v154_v0 = vlaneseq (!%p113_p2)  ;;  %v152_v2 = vld [vmem:[%s330_s1] sm:$0xff] (!%p113_p2) }
   0x6   : > { %116 = sbr.rel (%p113_p2) target bundleno = 23 (0x17), region = 28 }
   0x7   : > { %v155_v1 = vshrl.u32 (!%p113_p2), %v154_v0, 7 }
   0x9   : > { %v156_v3 = vsub.s32 (!%p113_p2), 0, %v155_v1  ;;  %v160_v4 = vsub.s32 (!%p113_p2), 1, %v155_v1  ;;  %v164_v5 = vsub.s32 (!%p113_p2), 2, %v155_v1  ;;  %v168_v6 = vsub.s32 (!%p113_p2), 3, %v155_v1 }
   0xa   : > { %v172_v7 = vsub.s32 (!%p113_p2), 4, %v155_v1  ;;  %v176_v8 = vsub.s32 (!%p113_p2), 5, %v155_v1  ;;  %v180_v9 = vsub.s32 (!%p113_p2), 6, %v155_v1  ;;  %v184_v10 = vsub.s32 (!%p113_p2), 7, %v155_v1 }
   0xb   : > { %v157_v14 = vrot.slane (!%p113_p2), %v152_v2, %v156_v3  ;;  %v161_v15 = vrot.slane (!%p113_p2), %v152_v2, %v160_v4  ;;  %v165_v16 = vrot.slane (!%p113_p2), %v152_v2, %v164_v5  ;;  %v169_v17 = vrot.slane (!%p113_p2), %v152_v2, %v168_v6 }
   0xc   : > { %v173_v21 = vrot.slane (!%p113_p2), %v152_v2, %v172_v7  ;;  %v177_v22 = vrot.slane (!%p113_p2), %v152_v2, %v176_v8  ;;  %v181_v23 = vrot.slane (!%p113_p2), %v152_v2, %v180_v9  ;;  %v185_v24 = vrot.slane (!%p113_p2), %v152_v2, %v184_v10 }
   0xd   : > { %s333_s10 = smov (!%p134_p3, %s265_s10), 1 }
   0xe   : > { %s276_s13 = sshll.u32 %s333_s10, 6 }
   0xf   : > { %s138_s16 = scalar_lea.vmem %s329_s0, %s276_s13  ;;  %s143_s19 = scalar_lea.vmem %s331_s2, %s276_s13 }
  0x10   : > { %v144_v11 = vld [vmem:[%s138_s16] sm:$0xff]  ;;  %v145_v12 = vld [vmem:[%s138_s16 + $0x8] sm:$0xff]  ;;  %v146_v13 = vld [vmem:[%s138_s16 + $0x10] sm:$0xff] }
  0x11   : > { %v147_v18 = vld [vmem:[%s138_s16 + $0x18] sm:$0xff]  ;;  %v148_v19 = vld [vmem:[%s138_s16 + $0x20] sm:$0xff]  ;;  %v149_v20 = vld [vmem:[%s138_s16 + $0x28] sm:$0xff]  ;;  %v194_v27 = vadd.f32 %v157_v14, %v144_v11  ;;  %v195_v28 = vadd.f32 %v161_v15, %v145_v12  ;;  %v196_v29 = vadd.f32 %v165_v16, %v146_v13 }
  0x12   : > { %v150_v25 = vld [vmem:[%s138_s16 + $0x30] sm:$0xff]  ;;  %v151_v26 = vld [vmem:[%s138_s16 + $0x38] sm:$0xff]  ;;  %v197_v30 = vadd.f32 %v169_v17, %v147_v18  ;;  %v198_v31 = vadd.f32 %v173_v21, %v148_v19  ;;  %v199_v32 = vadd.f32 %v177_v22, %v149_v20 }
  0x13   : > { %v200_v33 = vadd.f32 %v181_v23, %v150_v25  ;;  %v201_v34 = vadd.f32 %v185_v24, %v151_v26  ;;  %202 = vst [vmem:[%s143_s19] sm:$0xff] %v194_v27  ;;  %203 = vst [vmem:[%s143_s19 + $0x8] sm:$0xff] %v195_v28 }
  0x14   : > { %204 = vst [vmem:[%s143_s19 + $0x10] sm:$0xff] %v196_v29  ;;  %205 = vst [vmem:[%s143_s19 + $0x18] sm:$0xff] %v197_v30 }
  0x15   : > { %206 = vst [vmem:[%s143_s19 + $0x20] sm:$0xff] %v198_v31  ;;  %207 = vst [vmem:[%s143_s19 + $0x28] sm:$0xff] %v199_v32 }
  0x16   : > { %208 = vst [vmem:[%s143_s19 + $0x30] sm:$0xff] %v200_v33  ;;  %209 = vst [vmem:[%s143_s19 + $0x38] sm:$0xff] %v201_v34 }
  0x17 PF: > { %s12_s9 = sadd.s32 1, %s292_s9  }
  0x18   : > { %p9_p4 = scmp.ge.s32.totalorder %s12_s9, 4  }
  0x1a   :  { %11 = sbr.rel (!%p9_p4) target bundleno = 1 (0x1), region = 58 }

</bundles_post_ra>
